<compile_context>
chip_gen: v6e
topology: v6e:2x2x1
jax: 0.10.0
libtpu: 0.0.40
codegen_flags: <defaults>
</compile_context>

<pallas_src>
import jax
import jax.numpy as jnp
from jax.experimental import pallas as pl
from jax.experimental.pallas import tpu as pltpu


def _gap_kernel(x_ref, o_ref):
    # x_ref: (tb, HW, tc) tile in VMEM; o_ref: (tb, tc)
    hw = x_ref.shape[1]
    # Reduce over the spatial (sublane) axis, accumulating in f32 without
    # materializing an f32 copy of the whole tile.
    s = jnp.sum(x_ref[...], axis=1, dtype=jnp.float32)      # (tb, tc)
    o_ref[...] = (s * (1.0 / hw)).astype(o_ref.dtype)


def _pick_channel_tile(C):
    # Lane-dense channel tile: a multiple of 128 that divides C when
    # possible, otherwise the full channel extent (full-dim blocks are
    # always legal).
    if C % 128 == 0:
        for cand in (512, 256, 128):
            if C % cand == 0:
                return cand
    return C


def _pick_batch_tile(N):
    # Output block is (tb, tc): keep tb either the full batch or a
    # multiple of 8 (sublane-aligned).
    if N > 8 and N % 8 == 0:
        return 8
    return N


def global_avg_pool2d_nhwc(x_nhwc):
    """x_nhwc: (N, H*W, C) with channels on the lane axis -> (N, C) mean."""
    N, HW, C = x_nhwc.shape
    tc = _pick_channel_tile(C)
    tb = _pick_batch_tile(N)

    return pl.pallas_call(
        _gap_kernel,
        out_shape=jax.ShapeDtypeStruct((N, C), x_nhwc.dtype),
        grid=(N // tb, C // tc),
        in_specs=[pl.BlockSpec((tb, HW, tc), lambda i, j: (i, 0, j))],
        out_specs=pl.BlockSpec((tb, tc), lambda i, j: (i, j)),
        compiler_params=pltpu.CompilerParams(
            dimension_semantics=("parallel", "parallel"),
        ),
    )(x_nhwc)


def global_avg_pool2d(x):
    """x: (N, C, H, W) -> (N, C), mean over H and W.

    Matches F.avg_pool2d(x, kernel_size=x.size()[2:]).view(-1, x.size(1)).
    """
    N, C, H, W = x.shape
    # NCHW -> (N, H*W, C): channels land on the lane axis.
    # TODO(synk): in a full NHWC ResNet pipeline the preceding conv would
    # already emit this layout, making this transpose unnecessary.
    xt = jnp.transpose(x, (0, 2, 3, 1)).reshape(N, H * W, C)
    return global_avg_pool2d_nhwc(xt)


if __name__ == "__main__":
    k0, k1 = jax.random.split(jax.random.PRNGKey(0), 2)

    # Small shape consistent with the module's forward (NCHW input).
    N, C, H, W = 2, 4, 16, 16
    x = jax.random.normal(k0, (N, C, H, W), dtype=jnp.float32)
    y = jax.block_until_ready(global_avg_pool2d(x))
    y_ref = jnp.mean(x, axis=(2, 3))
    assert y.shape == (N, C), y.shape
    assert jnp.allclose(y, y_ref, atol=1e-5, rtol=1e-5)

    # Second small check exercising the lane-dense channel-tiled path
    # (ResNet50-like: C multiple of 128, HW = 7*7 = 49).
    N2, C2, H2, W2 = 2, 256, 7, 7
    x2 = jax.random.normal(k1, (N2, C2, H2, W2), dtype=jnp.float32)
    y2 = jax.block_until_ready(global_avg_pool2d(x2))
    y2_ref = jnp.mean(x2, axis=(2, 3))
    assert y2.shape == (N2, C2), y2.shape
    assert jnp.allclose(y2, y2_ref, atol=1e-5, rtol=1e-5)

    print("KERNEL_OK")
</pallas_src>

<mosaic_0001>
module attributes {stable_mosaic.version = 11 : i64} {
  func.func @_gap_kernel(%arg0: i32, %arg1: i32, %arg2: memref<2x256x4xf32, #tpu.memory_space<vmem>>, %arg3: memref<2x4xf32, #tpu.memory_space<vmem>>) attributes {dimension_semantics = [#tpu.dimension_semantics<parallel>, #tpu.dimension_semantics<parallel>], iteration_bounds = array<i64: 1, 1>, scalar_prefetch = 0 : i64, scratch_operands = 0 : i64, tpu.core_type = #tpu.core_type<tc>, window_params = [{transform_indices = @transform_0, window_bounds = array<i64: 2, 256, 4>}, {transform_indices = @transform_1, window_bounds = array<i64: 2, 4>}]} {
    %c0 = arith.constant 0 : index
    %c0_0 = arith.constant 0 : index
    %c0_1 = arith.constant 0 : index
    %0 = vector.load %arg2[%c0, %c0_0, %c0_1] : memref<2x256x4xf32, #tpu.memory_space<vmem>>, vector<2x256x4xf32>
    %cst = arith.constant dense<0.000000e+00> : vector<2x4xf32>
    %1 = vector.multi_reduction <add>, %0, %cst [1] : vector<2x256x4xf32> to vector<2x4xf32>
    %cst_2 = arith.constant 3.906250e-03 : f32
    %2 = vector.broadcast %cst_2 : f32 to vector<2x4xf32>
    %3 = arith.mulf %1, %2 : vector<2x4xf32>
    %c0_3 = arith.constant 0 : index
    %c0_4 = arith.constant 0 : index
    %4 = vector.load %arg3[%c0_3, %c0_4] : memref<2x4xf32, #tpu.memory_space<vmem>>, vector<2x4xf32>
    tpu.vector_store %arg3[%c0_3, %c0_4], %3 {strides = array<i32>} : memref<2x4xf32, #tpu.memory_space<vmem>>, vector<2x4xf32>,
    return
  }
  func.func @transform_0(%arg0: i32, %arg1: i32) -> (i32, i32, i32) {
    %c0_i32 = arith.constant 0 : i32
    %c0_i32_0 = arith.constant 0 : i32
    return %arg0, %c0_i32, %arg1 : i32, i32, i32
  }
  func.func @transform_1(%arg0: i32, %arg1: i32) -> (i32, i32) {
    %c0_i32 = arith.constant 0 : i32
    return %arg0, %arg1 : i32, i32
  }
}

</mosaic_0001>

<bundles_post_ra>
// kernel: tpu_custom_call.1
= control target key start
LH: loop header
LB: loop body
LE: loop exit
PB: predicated region body
PF: predicated region fallthrough
CT: control target
= control target key end

     0   :  { %6 = vsyncpa [#allocation3], 0  ;;  %vm73_vm0 = vcmask 31744   ;;  %vm216_vm1 = vcmask 1041409   ;;  %vm219_vm2 = vcmask 25600   ;;  %s528_s0 = inlined_call_operand.vmem [shape: f32[2,256,4], index: 0, kind: input, shape index: {}]   ;;  %s529_s1 = inlined_call_operand.hbm [shape: f32[2,4], index: 1, kind: output, shape index: {}]  }
   0x1   :  { %v9_v0 = vld [vmem:[%s528_s0] sm:$0xff]  ;;  %v10_v1 = vld [vmem:[%s528_s0 + $0x8] sm:$0xff]  ;;  %v11_v2 = vld [vmem:[%s528_s0 + $0x10] sm:$0xff] }
   0x2   :  { %v12_v3 = vld [vmem:[%s528_s0 + $0x18] sm:$0xff]  ;;  %v74_v4 = vsel %vm73_vm0, %v9_v0, 0.0  ;;  %v75_v5 = vsel %vm73_vm0, %v10_v1, 0.0  ;;  %v13_v6 = vld [vmem:[%s528_s0 + $0x20] sm:$0xff]  ;;  %v77_v8 = vsel %vm73_vm0, %v11_v2, 0.0  ;;  %v14_v10 = vld [vmem:[%s528_s0 + $0x28] sm:$0xff] }
   0x3   :  { %v76_v7 = vadd.f32 %v75_v5, %v74_v4  ;;  %v79_v9 = vsel %vm73_vm0, %v12_v3, 0.0  ;;  %v81_v12 = vsel %vm73_vm0, %v13_v6, 0.0  ;;  %v15_v13 = vld [vmem:[%s528_s0 + $0x30] sm:$0xff]  ;;  %v83_v15 = vsel %vm73_vm0, %v14_v10, 0.0  ;;  %v16_v16 = vld [vmem:[%s528_s0 + $0x38] sm:$0xff]  ;;  %v17_v19 = vld [vmem:[%s528_s0 + $0x40] sm:$0xff] }
   0x4   :  { %v85_v18 = vsel %vm73_vm0, %v15_v13, 0.0  ;;  %v41_v21 = vld [vmem:[%s528_s0 + $0x100] sm:$0xff]  ;;  %v42_v22 = vld [vmem:[%s528_s0 + $0x108] sm:$0xff]  ;;  %v43_v23 = vld [vmem:[%s528_s0 + $0x110] sm:$0xff]  ;;  %v87_v24 = vsel %vm73_vm0, %v16_v16, 0.0  ;;  %v89_v32 = vsel %vm73_vm0, %v17_v19, 0.0 }
   0x5   :  { %v78_v11 = vadd.f32 %v77_v8, %v76_v7  ;;  %v18_v25 = vld [vmem:[%s528_s0 + $0x48] sm:$0xff]  ;;  %v44_v26 = vld [vmem:[%s528_s0 + $0x118] sm:$0xff]  ;;  %v143_v28 = vsel %vm73_vm0, %v41_v21, 0.0  ;;  %v144_v29 = vsel %vm73_vm0, %v42_v22, 0.0  ;;  %v146_v30 = vsel %vm73_vm0, %v43_v23, 0.0  ;;  %v45_v31 = vld [vmem:[%s528_s0 + $0x120] sm:$0xff] }
   0x6   :  { %v145_v33 = vadd.f32 %v144_v29, %v143_v28  ;;  %v19_v34 = vld [vmem:[%s528_s0 + $0x50] sm:$0xff]  ;;  %v148_v36 = vsel %vm73_vm0, %v44_v26, 0.0  ;;  %v46_v37 = vld [vmem:[%s528_s0 + $0x128] sm:$0xff]  ;;  %v91_v38 = vsel %vm73_vm0, %v18_v25, 0.0  ;;  %v20_v40 = vld [vmem:[%s528_s0 + $0x58] sm:$0xff]  ;;  %v150_v42 = vsel %vm73_vm0, %v45_v31, 0.0 }
   0x7   :  { %v80_v14 = vadd.f32 %v79_v9, %v78_v11  ;;  %v47_v43 = vld [vmem:[%s528_s0 + $0x130] sm:$0xff]  ;;  %v93_v44 = vsel %vm73_vm0, %v19_v34, 0.0  ;;  %v21_v46 = vld [vmem:[%s528_s0 + $0x60] sm:$0xff]  ;;  %v152_v48 = vsel %vm73_vm0, %v46_v37, 0.0  ;;  %v48_v49 = vld [vmem:[%s528_s0 + $0x138] sm:$0xff]  ;;  %v95_v50 = vsel %vm73_vm0, %v20_v40, 0.0 }
   0x8   :  { %v147_v39 = vadd.f32 %v146_v30, %v145_v33  ;;  %v22_v52 = vld [vmem:[%s528_s0 + $0x68] sm:$0xff]  ;;  %v154_v54 = vsel %vm73_vm0, %v47_v43, 0.0  ;;  %v49_v55 = vld [vmem:[%s528_s0 + $0x140] sm:$0xff]  ;;  %v97_v56 = vsel %vm73_vm0, %v21_v46, 0.0  ;;  %v23_v58 = vld [vmem:[%s528_s0 + $0x70] sm:$0xff]  ;;  %v156_v60 = vsel %vm73_vm0, %v48_v49, 0.0 }
   0x9   :  { %v82_v17 = vadd.f32 %v81_v12, %v80_v14  ;;  %v50_v61 = vld [vmem:[%s528_s0 + $0x148] sm:$0xff]  ;;  %v99_v62 = vsel %vm73_vm0, %v22_v52, 0.0  ;;  %v24_v0 = vld [vmem:[%s528_s0 + $0x78] sm:$0xff]  ;;  %v158_v2 = vsel %vm73_vm0, %v49_v55, 0.0  ;;  %v51_v3 = vld [vmem:[%s528_s0 + $0x150] sm:$0xff]  ;;  %v101_v4 = vsel %vm73_vm0, %v23_v58, 0.0 }
   0xa   :  { %v149_v45 = vadd.f32 %v148_v36, %v147_v39  ;;  %v25_v6 = vld [vmem:[%s528_s0 + $0x80] sm:$0xff]  ;;  %v160_v8 = vsel %vm73_vm0, %v50_v61, 0.0  ;;  %v52_v9 = vld [vmem:[%s528_s0 + $0x158] sm:$0xff]  ;;  %v103_v10 = vsel %vm73_vm0, %v24_v0, 0.0  ;;  %v26_v12 = vld [vmem:[%s528_s0 + $0x88] sm:$0xff]  ;;  %v162_v14 = vsel %vm73_vm0, %v51_v3, 0.0 }
   0xb   :  { %v84_v20 = vadd.f32 %v83_v15, %v82_v17  ;;  %v53_v15 = vld [vmem:[%s528_s0 + $0x160] sm:$0xff]  ;;  %v105_v16 = vsel %vm73_vm0, %v25_v6, 0.0  ;;  %v54_v21 = vld [vmem:[%s528_s0 + $0x168] sm:$0xff]  ;;  %v107_v22 = vsel %vm73_vm0, %v26_v12, 0.0  ;;  %v56_v33 = vld [vmem:[%s528_s0 + $0x178] sm:$0xff] }
   0xc   :  { %v151_v51 = vadd.f32 %v150_v42, %v149_v45  ;;  %v166_v26 = vsel %vm73_vm0, %v53_v15, 0.0  ;;  %v29_v30 = vld [vmem:[%s528_s0 + $0xa0] sm:$0xff]  ;;  %v30_v36 = vld [vmem:[%s528_s0 + $0xa8] sm:$0xff]  ;;  %v31_v42 = vld [vmem:[%s528_s0 + $0xb0] sm:$0xff] }
   0xd   :  { %v86_v27 = vadd.f32 %v85_v18, %v84_v20  ;;  %v27_v18 = vld [vmem:[%s528_s0 + $0x90] sm:$0xff]  ;;  %v164_v20 = vsel %vm73_vm0, %v52_v9, 0.0  ;;  %v57_v39 = vld [vmem:[%s528_s0 + $0x180] sm:$0xff]  ;;  %v113_v40 = vsel %vm73_vm0, %v29_v30, 0.0  ;;  %v58_v45 = vld [vmem:[%s528_s0 + $0x188] sm:$0xff]  ;;  %v115_v46 = vsel %vm73_vm0, %v30_v36, 0.0 }
   0xe   :  { %v153_v57 = vadd.f32 %v152_v48, %v151_v51  ;;  %v109_v28 = vsel %vm73_vm0, %v27_v18, 0.0  ;;  %v32_v48 = vld [vmem:[%s528_s0 + $0xb8] sm:$0xff]  ;;  %v59_v51 = vld [vmem:[%s528_s0 + $0x190] sm:$0xff]  ;;  %v117_v52 = vsel %vm73_vm0, %v31_v42, 0.0 }
   0xf   :  { %v88_v35 = vadd.f32 %v87_v24, %v86_v27  ;;  %v28_v24 = vld [vmem:[%s528_s0 + $0x98] sm:$0xff]  ;;  %v55_v27 = vld [vmem:[%s528_s0 + $0x170] sm:$0xff]  ;;  %v119_v58 = vsel %vm73_vm0, %v32_v48, 0.0 }
  0x10   :  { %v155_v63 = vadd.f32 %v154_v54, %v153_v57  ;;  %v111_v34 = vsel %vm73_vm0, %v28_v24, 0.0  ;;  %v33_v54 = vld [vmem:[%s528_s0 + $0xc0] sm:$0xff]  ;;  %v60_v57 = vld [vmem:[%s528_s0 + $0x198] sm:$0xff] }
  0x11   :  { %v90_v41 = vadd.f32 %v89_v32, %v88_v35  ;;  %v168_v32 = vsel %vm73_vm0, %v54_v21, 0.0  ;;  %v121_v0 = vsel %vm73_vm0, %v33_v54, 0.0 }
  0x12   :  { %v157_v5 = vadd.f32 %v156_v60, %v155_v63  ;;  %v34_v60 = vld [vmem:[%s528_s0 + $0xc8] sm:$0xff]  ;;  %v61_v63 = vld [vmem:[%s528_s0 + $0x1a0] sm:$0xff] }
  0x13   :  { %v92_v47 = vadd.f32 %v91_v38, %v90_v41  ;;  %v170_v38 = vsel %vm73_vm0, %v55_v27, 0.0  ;;  %v123_v6 = vsel %vm73_vm0, %v34_v60, 0.0 }
  0x14   :  { %v159_v11 = vadd.f32 %v158_v2, %v157_v5  ;;  %v35_v2 = vld [vmem:[%s528_s0 + $0xd0] sm:$0xff]  ;;  %v62_v5 = vld [vmem:[%s528_s0 + $0x1a8] sm:$0xff] }
  0x15   :  { %v94_v53 = vadd.f32 %v93_v44, %v92_v47  ;;  %v172_v44 = vsel %vm73_vm0, %v56_v33, 0.0  ;;  %v125_v12 = vsel %vm73_vm0, %v35_v2, 0.0 }
  0x16   :  { %v161_v17 = vadd.f32 %v160_v8, %v159_v11  ;;  %v36_v8 = vld [vmem:[%s528_s0 + $0xd8] sm:$0xff]  ;;  %v63_v11 = vld [vmem:[%s528_s0 + $0x1b0] sm:$0xff] }
  0x17   :  { %v96_v59 = vadd.f32 %v95_v50, %v94_v53  ;;  %v174_v50 = vsel %vm73_vm0, %v57_v39, 0.0  ;;  %v127_v18 = vsel %vm73_vm0, %v36_v8, 0.0 }
  0x18   :  { %v163_v23 = vadd.f32 %v162_v14, %v161_v17  ;;  %v37_v14 = vld [vmem:[%s528_s0 + $0xe0] sm:$0xff]  ;;  %v64_v17 = vld [vmem:[%s528_s0 + $0x1b8] sm:$0xff] }
  0x19   :  { %v98_v1 = vadd.f32 %v97_v56, %v96_v59  ;;  %v176_v56 = vsel %vm73_vm0, %v58_v45, 0.0  ;;  %v129_v24 = vsel %vm73_vm0, %v37_v14, 0.0  ;;  %v69_v45 = vld [vmem:[%s528_s0 + $0x1e0] sm:$0xff] }
  0x1a   :  { %v165_v29 = vadd.f32 %v164_v20, %v163_v23  ;;  %v38_v20 = vld [vmem:[%s528_s0 + $0xe8] sm:$0xff]  ;;  %v65_v23 = vld [vmem:[%s528_s0 + $0x1c0] sm:$0xff] }
  0x1b   :  { %v100_v7 = vadd.f32 %v99_v62, %v98_v1  ;;  %v178_v62 = vsel %vm73_vm0, %v59_v51, 0.0  ;;  %v131_v30 = vsel %vm73_vm0, %v38_v20, 0.0 }
  0x1c   :  { %v167_v35 = vadd.f32 %v166_v26, %v165_v29  ;;  %v39_v26 = vld [vmem:[%s528_s0 + $0xf0] sm:$0xff]  ;;  %v66_v29 = vld [vmem:[%s528_s0 + $0x1c8] sm:$0xff] }
  0x1d   :  { %v102_v13 = vadd.f32 %v101_v4, %v100_v7  ;;  %v180_v4 = vsel %vm73_vm0, %v60_v57, 0.0  ;;  %v133_v36 = vsel %vm73_vm0, %v39_v26, 0.0  ;;  %v192_v39 = vsel %vm73_vm0, %v66_v29, 0.0  ;;  %v72_v57 = vld [vmem:[%s528_s0 + $0x1f8] sm:$0xff] }
  0x1e   :  { %v169_v41 = vadd.f32 %v168_v32, %v167_v35  ;;  %v40_v32 = vld [vmem:[%s528_s0 + $0xf8] sm:$0xff]  ;;  %v67_v35 = vld [vmem:[%s528_s0 + $0x1d0] sm:$0xff] }
  0x1f   :  { %v104_v19 = vadd.f32 %v103_v10, %v102_v13  ;;  %v182_v10 = vsel %vm73_vm0, %v61_v63, 0.0 }
  0x20   :  { %v171_v47 = vadd.f32 %v170_v38, %v169_v41  ;;  %v135_v41 = vsel %vm73_vm0, %v40_v32, 0.0 }
  0x21   :  { %v106_v25 = vadd.f32 %v105_v16, %v104_v19  ;;  %v184_v16 = vsel %vm73_vm0, %v62_v5, 0.0 }
  0x22   :  { %v173_v53 = vadd.f32 %v172_v44, %v171_v47  ;;  %v194_v44 = vsel %vm73_vm0, %v67_v35, 0.0 }
  0x23   :  { %v108_v31 = vadd.f32 %v107_v22, %v106_v25  ;;  %v186_v22 = vsel %vm73_vm0, %v63_v11, 0.0 }
  0x24   :  { %v175_v59 = vadd.f32 %v174_v50, %v173_v53  ;;  %v71_v53 = vld [vmem:[%s528_s0 + $0x1f0] sm:$0xff] }
  0x25   :  { %v110_v37 = vadd.f32 %v109_v28, %v108_v31  ;;  %v188_v28 = vsel %vm73_vm0, %v64_v17, 0.0 }
  0x26   :  { %v177_v1 = vadd.f32 %v176_v56, %v175_v59  ;;  %v202_v59 = vsel %vm73_vm0, %v71_v53, 0.0 }
  0x27   :  { %v112_v43 = vadd.f32 %v111_v34, %v110_v37  ;;  %v190_v34 = vsel %vm73_vm0, %v65_v23, 0.0 }
  0x28   :  { %v179_v7 = vadd.f32 %v178_v62, %v177_v1  ;;  %v204_v62 = vsel %vm73_vm0, %v72_v57, 0.0 }
  0x29   :  { %v114_v49 = vadd.f32 %v113_v40, %v112_v43  ;;  %v68_v40 = vld [vmem:[%s528_s0 + $0x1d8] sm:$0xff] }
  0x2a   :  { %v181_v13 = vadd.f32 %v180_v4, %v179_v7  ;;  %v196_v48 = vsel %vm73_vm0, %v68_v40, 0.0 }
  0x2b   :  { %v116_v55 = vadd.f32 %v115_v46, %v114_v49  ;;  %v70_v49 = vld [vmem:[%s528_s0 + $0x1e8] sm:$0xff]  ;;  %s258_s0 = smov [#allocation2]  }
  0x2c   :  { %v183_v19 = vadd.f32 %v182_v10, %v181_v13  ;;  %v200_v56 = vsel %vm73_vm0, %v70_v49, 0.0  ;;  %s227_s18 = sshll.u32 %s258_s0, 4  ;;  %s228_s18 = int_to_ptr.vmem [resolvable:$true] %s227_s18 }
  0x2d   :  { %v118_v61 = vadd.f32 %v117_v52, %v116_v55  ;;  %v198_v52 = vsel %vm73_vm0, %v69_v45, 0.0  ;;  %s236_s19 = scalar_lea.vmem %s228_s18, 32  ;;  %p241_p1 = scmp.lt.s32.totalorder %s228_s18, %s228_s18 }
  0x2e   :  { %v185_v25 = vadd.f32 %v184_v16, %v183_v19  ;;  %p237_p0 = scmp.ne.s32.totalorder %s228_s18, %s236_s19  ;;  %p242_p2 = scmp.lt.s32.totalorder %s236_s19, %s236_s19 }
  0x2f   :  { %v120_v3 = vadd.f32 %v119_v58, %v118_v61 }
  0x30   :  { %v187_v31 = vadd.f32 %v186_v22, %v185_v25  ;;  %p243_p3 = por %p242_p2, %p241_p1 }
  0x31   :  { %v122_v9 = vadd.f32 %v121_v0, %v120_v3 }
  0x32   :  { %v189_v37 = vadd.f32 %v188_v28, %v187_v31  ;;  %p244_p4 = pnand %p243_p3, %p237_p0 }
  0x33   :  { %v124_v15 = vadd.f32 %v123_v6, %v122_v9 }
  0x34   :  { %v191_v42 = vadd.f32 %v190_v34, %v189_v37 }
  0x35   :  { %v126_v21 = vadd.f32 %v125_v12, %v124_v15 }
  0x36   :  { %v193_v46 = vadd.f32 %v192_v39, %v191_v42 }
  0x37   :  { %v128_v27 = vadd.f32 %v127_v18, %v126_v21 }
  0x38   :  { %v195_v50 = vadd.f32 %v194_v44, %v193_v46 }
  0x39   :  { %v130_v33 = vadd.f32 %v129_v24, %v128_v27 }
  0x3a   :  { %v197_v54 = vadd.f32 %v196_v48, %v195_v50 }
  0x3b   :  { %v132_v38 = vadd.f32 %v131_v30, %v130_v33 }
  0x3c   :  { %v199_v58 = vadd.f32 %v198_v52, %v197_v54 }
  0x3d   :  { %v134_v43 = vadd.f32 %v133_v36, %v132_v38 }
  0x3e   :  { %v201_v61 = vadd.f32 %v200_v56, %v199_v58 }
  0x3f   :  { %v136_v47 = vadd.f32 %v135_v41, %v134_v43 }
  0x40   :  { %v203_v63 = vadd.f32 %v202_v59, %v201_v61 }
  0x41   :  { %v137_v51 = vrot.slane %v136_v47, 4 }
  0x42   :  { %v205_v1 = vadd.f32 %v204_v62, %v203_v63 }
  0x43   :  { %v138_v55 = vadd.f32 %v137_v51, %v136_v47 }
  0x44   :  { %v206_v2 = vrot.slane %v205_v1, 4 }
  0x45   :  { %v139_v60 = vrot.slane %v138_v55, 2 }
  0x46   :  { %v207_v4 = vadd.f32 %v206_v2, %v205_v1 }
  0x47   :  { %v140_v0 = vadd.f32 %v139_v60, %v138_v55 }
  0x48   :  { %v208_v5 = vrot.slane %v207_v4, 2 }
  0x49   :  { %v141_v3 = vrot.slane %v140_v0, 1 }
  0x4a   :  { %v209_v7 = vadd.f32 %v208_v5, %v207_v4 }
  0x4b   :  { %v142_v6 = vadd.f32 %v141_v3, %v140_v0 }
  0x4c   :  { %v210_v8 = vrot.slane %v209_v7, 1 }
  0x4d   :  { %v212_v10 = vmul.f32 0.00390625, %v142_v6 }
  0x4e   :  { %v211_v9 = vadd.f32 %v210_v8, %v209_v7 }
  0x50   :  { %v213_v11 = vmul.f32 0.00390625, %v211_v9 }
  0x52   :  { %v217_v12 = vsel %vm216_vm1, %v213_v11, %v212_v10 }
  0x53   :  { %220 = vst.msk [vmem:[#allocation2] sm:$0x3] %vm219_vm2, %v217_v12 }
  0x54   :  { %247 = shalt.err (!%p244_p4)
}
  0x55   :  { %230 = dma.vmem_to_hbm [thread:$0]  %s228_s18, 32, %s529_s1, [#allocation3]  }
  0x56   :  { %256 = dma.done.wait [#allocation3], 32  }
  0x57   :  { %257 = vsyncadd [#allocation3], 4294967264 }
  0x58   :  { %234 = vsyncpa [#allocation3], 1 }

</bundles_post_ra>
